<compile_context>
chip_gen: v7x
topology: tpu7x:2x2x1
jax: 0.10.0
libtpu: 0.0.40
codegen_flags: <defaults>
</compile_context>

<pallas_src>
import functools

import jax
import jax.numpy as jnp
from jax.experimental import pallas as pl
from jax.experimental.pallas import tpu as pltpu


def _aexp_kernel(pred_ref, labels_ref, out_ref, *, inv_a):
    pred = pred_ref[...].astype(jnp.float32)                    # (TN, C) f32 compute
    tn, c = pred.shape

    # Numerically stable softmax numerator/denominator (no per-element divide).
    m = jnp.max(pred, axis=-1, keepdims=True)                   # (TN, 1)
    e = jnp.exp(pred - m)                                       # (TN, C)
    denom = jnp.sum(e, axis=-1, keepdims=True)                  # (TN, 1)

    # softmax value at the true label via fused one-hot mask + lane reduce
    # (avoids a per-row gather on TPU).
    class_ids = jax.lax.broadcasted_iota(jnp.int32, (tn, c), 1)  # (TN, C)
    labels = labels_ref[...]                                     # (TN, 1) int32
    onehot = (class_ids == labels).astype(jnp.float32)           # (TN, C)
    e_lab = jnp.sum(e * onehot, axis=-1, keepdims=True)          # (TN, 1)

    p_lab = e_lab / denom                                        # (TN, 1) one divide / row
    out_ref[...] = jnp.exp(-p_lab * inv_a)                       # per-sample loss


def _pick_tile_n(n):
    # Largest row-tile (multiple of 8, capped at 512) that divides N; fall back
    # to the full batch (full-extent block is always legal).
    for t in (512, 256, 128, 64, 32, 16, 8):
        if n % t == 0:
            return t
    return n


def aexp_loss(pred, labels, *, a=2.5, scale=1.0, tile_n=None):
    n, c = pred.shape
    if tile_n is None:
        tile_n = _pick_tile_n(n)
    assert n % tile_n == 0, "batch must be divisible by the row tile"
    grid = (n // tile_n,)

    kernel = functools.partial(_aexp_kernel, inv_a=1.0 / float(a))

    itemsize = jnp.dtype(pred.dtype).itemsize
    cost = pl.CostEstimate(
        flops=6 * n * c,                      # sub, cmp/max, mul, adds, divide
        transcendentals=n * c + n,            # exp over logits + exp(-p/a) per row
        bytes_accessed=n * c * itemsize + n * 4 + n * 4,
    )

    per_sample = pl.pallas_call(
        kernel,
        out_shape=jax.ShapeDtypeStruct((n, 1), jnp.float32),
        grid_spec=pltpu.PrefetchScalarGridSpec(
            num_scalar_prefetch=0,
            grid=grid,
            in_specs=[
                pl.BlockSpec((tile_n, c), lambda i: (i, 0)),     # logits (native dtype)
                pl.BlockSpec((tile_n, 1), lambda i: (i, 0)),     # labels
            ],
            out_specs=pl.BlockSpec((tile_n, 1), lambda i: (i, 0)),
        ),
        compiler_params=pltpu.CompilerParams(
            dimension_semantics=("parallel",),                   # shards over TCs on v7x
            vmem_limit_bytes=32 * 1024 * 1024,                   # safe on v5e/v6e/v7x
        ),
        cost_estimate=cost,
    )(pred, labels.reshape(n, 1).astype(jnp.int32))

    # Final mean + scale: O(N) scalars, done in plain JAX so the row grid stays
    # fully parallel (no serialized accumulator across grid steps).
    return (jnp.sum(per_sample) / jnp.float32(n)) * jnp.float32(scale)


def aexp_reference(pred, labels, *, num_classes, a=2.5, scale=1.0):
    """Plain-JAX reference mirroring the PyTorch module (for verification)."""
    sm = jax.nn.softmax(pred.astype(jnp.float32), axis=1)
    onehot = jax.nn.one_hot(labels, num_classes, dtype=jnp.float32)
    loss = jnp.exp(-jnp.sum(onehot * sm, axis=1) / jnp.float32(a))
    return jnp.mean(loss) * jnp.float32(scale)


if __name__ == "__main__":
    N = 8             # batch (small demo; kernel tiles any multiple-of-8 batch)
    C = 100           # num_classes (module default)
    A = 2.5           # module default a
    SCALE = 1.0       # module default scale

    key = jax.random.PRNGKey(0)
    k_pred, k_lab = jax.random.split(key)

    # bf16 logits: kernel DMAs the narrow dtype and upcasts in VMEM.
    pred = jax.random.normal(k_pred, (N, C), dtype=jnp.float32).astype(jnp.bfloat16)
    labels = jax.random.randint(k_lab, (N,), 0, C, dtype=jnp.int32)

    loss = aexp_loss(pred, labels, a=A, scale=SCALE)
    jax.block_until_ready(loss)

    ref = aexp_reference(pred, labels, num_classes=C, a=A, scale=SCALE)
    assert jnp.allclose(loss, ref, rtol=1e-5, atol=1e-5), (loss, ref)

    # TODO(synk): out-of-range labels silently give one_hot==0 (p_label=0) here,
    # whereas PyTorch's F.one_hot would raise; not reachable with valid labels.
    print("KERNEL_OK")
</pallas_src>

<mosaic_0001>
module attributes {stable_mosaic.version = 11 : i64} {
  func.func @_aexp_kernel(%arg0: i32, %arg1: memref<8x100xbf16, #tpu.memory_space<vmem>>, %arg2: memref<8x1xi32, #tpu.memory_space<vmem>>, %arg3: memref<8x1xf32, #tpu.memory_space<vmem>>) attributes {dimension_semantics = [#tpu.dimension_semantics<parallel>], iteration_bounds = array<i64: 1>, scalar_prefetch = 0 : i64, scratch_operands = 0 : i64, tpu.core_type = #tpu.core_type<tc>, window_params = [{transform_indices = @transform_0, window_bounds = array<i64: 8, 100>}, {transform_indices = @transform_1, window_bounds = array<i64: 8, 1>}, {transform_indices = @transform_2, window_bounds = array<i64: 8, 1>}]} {
    %c0 = arith.constant 0 : index
    %c0_0 = arith.constant 0 : index
    %0 = vector.load %arg1[%c0, %c0_0] : memref<8x100xbf16, #tpu.memory_space<vmem>>, vector<8x100xbf16>
    %1 = arith.extf %0 : vector<8x100xbf16> to vector<8x100xf32>
    %cst = arith.constant dense<0xFF800000> : vector<8xf32>
    %2 = vector.multi_reduction <maximumf>, %1, %cst [1] : vector<8x100xf32> to vector<8xf32>
    %3 = vector.shape_cast %2 : vector<8xf32> to vector<8x1xf32>
    %4 = vector.broadcast %3 : vector<8x1xf32> to vector<8x100xf32>
    %5 = arith.subf %1, %4 : vector<8x100xf32>
    %6 = math.exp %5 : vector<8x100xf32>
    %cst_1 = arith.constant dense<0.000000e+00> : vector<8xf32>
    %7 = vector.multi_reduction <add>, %6, %cst_1 [1] : vector<8x100xf32> to vector<8xf32>
    %8 = vector.shape_cast %7 : vector<8xf32> to vector<8x1xf32>
    %9 = tpu.iota {dimensions = array<i32: 1>} : vector<8x100xi32>
    %c0_2 = arith.constant 0 : index
    %c0_3 = arith.constant 0 : index
    %10 = vector.load %arg2[%c0_2, %c0_3] : memref<8x1xi32, #tpu.memory_space<vmem>>, vector<8x1xi32>
    %11 = vector.broadcast %10 : vector<8x1xi32> to vector<8x100xi32>
    %12 = arith.cmpi eq, %9, %11 : vector<8x100xi32>
    %13 = arith.extui %12 : vector<8x100xi1> to vector<8x100xi32>
    %14 = arith.sitofp %13 : vector<8x100xi32> to vector<8x100xf32>
    %15 = arith.mulf %6, %14 : vector<8x100xf32>
    %cst_4 = arith.constant dense<0.000000e+00> : vector<8xf32>
    %16 = vector.multi_reduction <add>, %15, %cst_4 [1] : vector<8x100xf32> to vector<8xf32>
    %17 = vector.shape_cast %16 : vector<8xf32> to vector<8x1xf32>
    %18 = arith.divf %17, %8 : vector<8x1xf32>
    %cst_5 = arith.constant 0.000000e+00 : f32
    %19 = vector.broadcast %cst_5 : f32 to vector<8x1xf32>
    %20 = arith.subf %19, %18 : vector<8x1xf32>
    %cst_6 = arith.constant 4.000000e-01 : f32
    %21 = vector.broadcast %cst_6 : f32 to vector<8x1xf32>
    %22 = arith.mulf %20, %21 : vector<8x1xf32>
    %23 = math.exp %22 : vector<8x1xf32>
    %c0_7 = arith.constant 0 : index
    %c0_8 = arith.constant 0 : index
    %24 = vector.load %arg3[%c0_7, %c0_8] : memref<8x1xf32, #tpu.memory_space<vmem>>, vector<8x1xf32>
    tpu.vector_store %arg3[%c0_7, %c0_8], %23 {strides = array<i32>} : memref<8x1xf32, #tpu.memory_space<vmem>>, vector<8x1xf32>,
    return
  }
  func.func @transform_0(%arg0: i32) -> (i32, i32) {
    %c0_i32 = arith.constant 0 : i32
    %c0_i32_0 = arith.constant 0 : i32
    return %arg0, %c0_i32 : i32, i32
  }
  func.func @transform_1(%arg0: i32) -> (i32, i32) {
    %c0_i32 = arith.constant 0 : i32
    %c0_i32_0 = arith.constant 0 : i32
    return %arg0, %c0_i32 : i32, i32
  }
  func.func @transform_2(%arg0: i32) -> (i32, i32) {
    %c0_i32 = arith.constant 0 : i32
    %c0_i32_0 = arith.constant 0 : i32
    return %arg0, %c0_i32 : i32, i32
  }
}

</mosaic_0001>

<bundles_post_ra>
// kernel: tpu_custom_call.1
= control target key start
LH: loop header
LB: loop body
LE: loop exit
PB: predicated region body
PF: predicated region fallthrough
CT: control target
= control target key end

     0   :  { %vm13_vm0 = vcmask 818176   ;;  %v58_v1 = vmov 0   ;;  %v23_v7 = vlaneseq  ;;  %v59_v11 = vmov 0.0   ;;  %s87_s0 = inlined_call_operand.vmem [shape: bf16[8,100], index: 0, kind: input, shape index: {}]   ;;  %s88_s1 = inlined_call_operand.vmem [shape: s32[8,1], index: 1, kind: input, shape index: {}]   ;;  %s89_s2 = inlined_call_operand.vmem [shape: f32[8,1], index: 2, kind: output, shape index: {}]  }
   0x1   :  { %v11_v0 = vld [vmem:[%s87_s0] sm:$0xf]  ;;  %51 = vset.pattern.permute.xlu0 %v58_v1  ;;  %vm42_vm2 = vcmask 7168  }
   0x2   :  { %v12_v2 = vunpack.c.l.bf16 %v11_v0  ;;  %v25_v4 = vld [vmem:[%s88_s1] sm:$0xff]  ;;  %v24_v9 = vand.u32 127, %v23_v7 }
   0x4   :  { %v14_v3 = vsel %vm13_vm0, %v12_v2, -inf }
   0x5   :  { %15 = vmax.xlane.f32.xlu0 %v14_v3 }
  0x1b   :  { %27 = vperm.xlu0 %51, %v25_v4  }
  0x92   :  { %v16_v5 = vpop.xlane.xlu0 %15 }
  0x93   :  { %v17_v6 = vsub.f32 %v12_v2, %v16_v5 }
  0x95   :  { %v18_v8 = vmul.f32 1.442695, %v17_v6 }
  0x97   :  { %52 = vpow2.f32 %v18_v8 }
  0x9a   :  { %v28_v10 = vpop.permute.xlu0 %27 }
  0x9b   :  { %vm29_vm1 = vcmp.eq.s32.totalorder %v24_v9, %v28_v10 }
  0x9c   :  { %v48_v12 = vsel %vm29_vm1, 1.0, %v59_v11 }
  0xa1   :  { %v53_v13 = vpop.eup %52 }
  0xa2   :  { %v20_v14 = vsel %vm13_vm0, %v53_v13, 0.0  ;;  %v32_v15 = vmul.f32 %v53_v13, %v48_v12 }
  0xa3   :  { %21 = vadd.xlane.f32.xlu1 %v20_v14 }
  0xa4   :  { %v33_v16 = vsel %vm13_vm0, %v32_v15, 0.0 }
  0xa7   :  { %34 = vadd.xlane.f32.xlu1 %v33_v16 }
 0x130   :  { %v22_v17 = vpop.xlane.xlu1 %21 }
 0x131   :  { %54 = vrcp.f32 %v22_v17 }
 0x134   :  { %v35_v19 = vpop.xlane.xlu1 %34 }
 0x13b   :  { %v55_v18 = vpop.eup %54 }
 0x13c   :  { %v37_v20 = vmul.f32 %v55_v18, %v35_v19 }
 0x13e   :  { %v38_v21 = vsub.f32 0.0, %v37_v20 }
 0x140   :  { %v39_v22 = vmul.f32 0.4, %v38_v21 }
 0x142   :  { %v40_v23 = vmul.f32 1.442695, %v39_v22 }
 0x144   :  { %56 = vpow2.f32 %v40_v23 }
 0x14e   :  { %v57_v24 = vpop.eup %56 }
 0x14f   :  { %43 = vst.msk [vmem:[%s89_s2] sm:$0xff] %vm42_vm2, %v57_v24 }

</bundles_post_ra>
